<compile_context>
chip_gen: v7x
topology: tpu7x:2x2x1
jax: 0.10.0
libtpu: 0.0.40
codegen_flags: <defaults>
</compile_context>

<pallas_src>
import functools

import jax
import jax.numpy as jnp
from jax import lax
from jax.experimental import pallas as pl
from jax.experimental.pallas import tpu as pltpu


# ----------------------------------------------------------------------------
# helpers
# ----------------------------------------------------------------------------
def _round_up(x, m):
    return ((x + m - 1) // m) * m


def _cdiv(a, b):
    return -(-a // b)


@functools.lru_cache(maxsize=1)
def _vmem_budget():
    """Scoped-VMEM budget gated on generation: ~half of physical, capped at 64 MiB
    (=> 32 MiB on v7x's 64 MiB VMEM, 64 MiB on v5e/v6e's 128 MiB)."""
    cap = 64 * 1024 * 1024
    try:
        info = pltpu.get_tpu_info()
        cap = int(getattr(info, "vmem_capacity_bytes", cap))
    except Exception:
        pass
    return max(16 * 1024 * 1024, min(cap // 2, 64 * 1024 * 1024))


# ----------------------------------------------------------------------------
# Kernel 1: weighted softmax cross-entropy (full-dim class block, 1 output tile)
# ----------------------------------------------------------------------------
def _ce_kernel(logits_ref, cls_ref, out_ref,
               *, trc, num_classes, eos_coef, r_learnable, r_valid):
    """One row-tile of weighted CE for two row segments (learnable | prompt).

    The four partial sums (loss/weight per branch) are packed into lanes 0..3
    of sublane 0 of a single lane-dense (8,128) output tile per grid step, so
    the row axis stays "parallel" and the host does one dense reduce.
    """
    r = pl.program_id(0)

    x = logits_ref[...].astype(jnp.float32)                     # [TRC, C1]
    cls = cls_ref[...]                                           # [TRC, 1] int32

    lane = lax.broadcasted_iota(jnp.int32, x.shape, 1)
    m = jnp.max(x, axis=-1, keepdims=True)
    lse = m + jnp.log(jnp.sum(jnp.exp(x - m), axis=-1, keepdims=True))
    x_at_cls = jnp.sum(jnp.where(lane == cls, x, 0.0), axis=-1, keepdims=True)
    nll = lse - x_at_cls                                         # [TRC, 1]

    # per-row weight (eos_coef on the no-object class), validity, branch id
    w = jnp.where(cls == num_classes, eos_coef, 1.0)
    row = r * trc + lax.broadcasted_iota(jnp.int32, (trc, 1), 0)
    valid = jnp.where(row < r_valid, 1.0, 0.0)
    is_l = jnp.where(row < r_learnable, 1.0, 0.0)
    wl = w * valid * is_l
    wp = w * valid - wl

    ls_l = jnp.sum(nll * wl, axis=0, keepdims=True)              # (1,1)
    ws_l = jnp.sum(wl, axis=0, keepdims=True)
    ls_p = jnp.sum(nll * wp, axis=0, keepdims=True)
    ws_p = jnp.sum(wp, axis=0, keepdims=True)

    lane8 = lax.broadcasted_iota(jnp.int32, (8, 128), 1)
    sub8 = lax.broadcasted_iota(jnp.int32, (8, 128), 0)

    def put(idx, v):
        return jnp.where((sub8 == 0) & (lane8 == idx), v, 0.0)

    out_ref[...] = put(0, ls_l) + put(1, ws_l) + put(2, ls_p) + put(3, ws_p)


def _ce_branch_sums(logits, classes, *, num_classes, eos_coef, rows_learnable):
    """Weighted-CE partial sums for up to two row segments (learnable|prompt)."""
    rv, c1 = logits.shape
    trc = min(_round_up(max(rv, 1), 8), 512)
    rp = _round_up(rv, trc)

    # only the (small) row axis is padded; class axis uses a full-dim block
    logits_p = jnp.pad(logits, ((0, rp - rv), (0, 0)))
    cls_p = jnp.pad(classes.astype(jnp.int32), (0, rp - rv),
                    constant_values=num_classes).reshape(rp, 1)

    n_tiles = rp // trc
    kernel = functools.partial(
        _ce_kernel, trc=trc, num_classes=num_classes, eos_coef=float(eos_coef),
        r_learnable=rows_learnable, r_valid=rv)

    out = pl.pallas_call(
        kernel,
        out_shape=jax.ShapeDtypeStruct((n_tiles * 8, 128), jnp.float32),
        grid=(n_tiles,),
        in_specs=[pl.BlockSpec((trc, c1), lambda r: (r, 0)),
                  pl.BlockSpec((trc, 1), lambda r: (r, 0))],
        out_specs=pl.BlockSpec((8, 128), lambda r: (r, 0)),
        compiler_params=pltpu.CompilerParams(
            dimension_semantics=("parallel",), vmem_limit_bytes=_vmem_budget()),
    )(logits_p, cls_p)

    sums = jnp.sum(out, axis=0)                                   # (128,) dense reduce
    return sums[0], sums[1], sums[2], sums[3]


# ----------------------------------------------------------------------------
# Kernel 2: sigmoid-BCE + dice partial sums over mask pixels
# ----------------------------------------------------------------------------
def _mask_kernel(pred_ref, tgt_ref, bce_ref, inter_ref, den_ref, *, n_chunks):
    """Pixel axis is innermost ("arbitrary"); per-row lane-dense (tr,128)
    accumulators live directly in the resident output blocks, so the hot loop
    is pure VPU/EUP (no cross-lane reductions).  The leading size-2 grid axis
    splits the pixel range in half so both v7x TensorCores stay busy even when
    the row-tile count is 1.

    Padding convention: padded pred = -1e4, padded tgt = 0 -> exp(-|x|)=0,
    max(x,0)=0, sigmoid=0, so padded pixels (and fully padded rows) contribute
    exactly zero to bce / inter / den.
    """
    c = pl.program_id(2)

    @pl.when(c == 0)
    def _():
        bce_ref[...] = jnp.zeros_like(bce_ref)
        inter_ref[...] = jnp.zeros_like(inter_ref)
        den_ref[...] = jnp.zeros_like(den_ref)

    bce_l = jnp.zeros(bce_ref.shape, jnp.float32)
    inter_l = jnp.zeros(bce_ref.shape, jnp.float32)
    den_l = jnp.zeros(bce_ref.shape, jnp.float32)

    for j in range(n_chunks):                        # static, lane-aligned chunks
        sl = slice(j * 128, (j + 1) * 128)
        x = pred_ref[:, sl].astype(jnp.float32)      # [TR, 128]
        t = tgt_ref[:, sl].astype(jnp.float32)
        e = jnp.exp(-jnp.abs(x))                     # single exp per element
        inv1pe = pl.reciprocal(1.0 + e, approx=True)
        p = jnp.where(x >= 0.0, inv1pe, e * inv1pe)  # stable sigmoid
        bce_l = bce_l + (jnp.maximum(x, 0.0) - x * t + jnp.log(1.0 + e))
        inter_l = inter_l + p * t
        den_l = den_l + (p + t)

    bce_ref[...] += bce_l
    inter_ref[...] += inter_l
    den_ref[...] += den_l


def _mask_tiles(n_rows, n_pix, elem_bytes, budget):
    # rows: multiple of 16 (bf16 sublane packing safe), capped at 256
    tr = min(_round_up(max(n_rows, 1), 16), 256)
    # double-buffered pred+tgt input tiles should use at most ~half the budget
    per_px_bytes = 2 * tr * elem_bytes
    tp_max = ((budget // 2) // per_px_bytes) // 128 * 128
    tp_max = int(max(128, min(tp_max, 4096)))
    # adaptive pixel tile: pad waste < 128 px/row; force an even tile count so
    # the size-2 leading "parallel" axis splits the range evenly
    n_c = _cdiv(max(n_pix, 1), tp_max)
    n_c_half = _cdiv(n_c, 2)
    n_c = 2 * n_c_half
    tp = _round_up(_cdiv(max(n_pix, 1), n_c), 128)
    return tr, tp, n_c, n_c_half


def _mask_branch_sums(pred_segs, tgt_segs):
    """Per-row bce / intersection / denominator sums for a list of mask
    segments.  Segments are written ONCE into a single pre-sized padded buffer
    (no concat→concat→pad pipeline)."""
    pred_dtype = pred_segs[0].dtype
    n = sum(int(s.shape[0]) for s in pred_segs)
    n_pix = int(pred_segs[0].shape[1])
    elem_bytes = jnp.dtype(pred_dtype).itemsize + 2          # pred + bf16 target
    budget = _vmem_budget()
    tr, tp, n_c, n_c_half = _mask_tiles(n, n_pix, elem_bytes, budget)
    rp, pp = _round_up(n, tr), n_c * tp
    n_r = rp // tr

    pred_buf = jnp.full((rp, pp), -1e4, dtype=pred_dtype)
    tgt_buf = jnp.zeros((rp, pp), dtype=jnp.bfloat16)
    off = 0
    for ps, ts in zip(pred_segs, tgt_segs):
        pred_buf = lax.dynamic_update_slice(pred_buf, ps, (off, 0))
        tgt_buf = lax.dynamic_update_slice(tgt_buf, ts, (off, 0))
        off += int(ps.shape[0])

    kernel = functools.partial(_mask_kernel, n_chunks=tp // 128)
    outs = pl.pallas_call(
        kernel,
        out_shape=tuple(jax.ShapeDtypeStruct((2 * rp, 128), jnp.float32)
                        for _ in range(3)),
        grid=(2, n_r, n_c_half),
        in_specs=[pl.BlockSpec((tr, tp), lambda h, r, c: (r, h * n_c_half + c)),
                  pl.BlockSpec((tr, tp), lambda h, r, c: (r, h * n_c_half + c))],
        out_specs=tuple(pl.BlockSpec((tr, 128), lambda h, r, c: (h * n_r + r, 0))
                        for _ in range(3)),
        compiler_params=pltpu.CompilerParams(
            dimension_semantics=("parallel", "parallel", "arbitrary"),
            vmem_limit_bytes=budget),
    )(pred_buf, tgt_buf)

    def per_row(o):
        # combine the two pixel halves and the 128 accumulator lanes
        return jnp.sum(o.reshape(2, rp, 128), axis=(0, 2))[:n]

    bce_rows, inter_rows, den_rows = map(per_row, outs)
    return bce_rows, inter_rows, den_rows, n_pix


# ----------------------------------------------------------------------------
# Batched loss assembly (both query branches in 2 pallas_calls total)
# ----------------------------------------------------------------------------
def _compute_losses(preps, num_classes, eos_coef):
    preps = [p for p in preps if p is not None]
    assert preps, "no query branch produced loss inputs"
    two = len(preps) == 2

    # ---- classification ---------------------------------------------------
    logits = jnp.concatenate([p['logits'] for p in preps], axis=0)
    classes = jnp.concatenate([p['classes'] for p in preps], axis=0)
    rows_l = preps[0]['logits'].shape[0] if two else logits.shape[0]
    ls_l, ws_l, ls_p, ws_p = _ce_branch_sums(
        logits, classes, num_classes=num_classes, eos_coef=eos_coef,
        rows_learnable=rows_l)
    ce_l = ls_l / jnp.maximum(ws_l, 1e-12)
    if two:
        ce_p = ls_p / jnp.maximum(ws_p, 1e-12)
        loss_ce = 0.5 * (ce_l + ce_p)                 # wrapper's 0.5-average
    else:
        loss_ce = ce_l

    # ---- masks --------------------------------------------------------------
    pred_segs = [s for p in preps for s in p['pred_segs']]
    tgt_segs = [s for p in preps for s in p['tgt_segs']]
    if not pred_segs:
        zero = jnp.zeros((), jnp.float32)
        return {'loss_ce': loss_ce, 'loss_mask': zero, 'loss_dice': zero}

    bce_rows, inter_rows, den_rows, n_pix = _mask_branch_sums(pred_segs, tgt_segs)
    # dice nonlinearity in exact f32 on host (runs once per matched instance)
    dice_rows = 1.0 - (2.0 * inter_rows + 1.0) / (den_rows + 1.0)
    n_total = int(bce_rows.shape[0])

    if two:
        n_l = sum(int(s.shape[0]) for s in preps[0]['pred_segs'])
        n_p = n_total - n_l
        lm_l = jnp.sum(bce_rows[:n_l]) / (float(n_pix) * max(n_l, 1))
        ld_l = jnp.sum(dice_rows[:n_l]) / max(n_l, 1)
        lm_p = jnp.sum(bce_rows[n_l:]) / (float(n_pix) * max(n_p, 1))
        ld_p = jnp.sum(dice_rows[n_l:]) / max(n_p, 1)
        loss_mask = 0.5 * (lm_l + lm_p)               # exact wrapper semantics
        loss_dice = 0.5 * (ld_l + ld_p)
    else:
        loss_mask = jnp.sum(bce_rows) / (float(n_pix) * max(n_total, 1))
        loss_dice = jnp.sum(dice_rows) / max(n_total, 1)

    return {'loss_ce': loss_ce, 'loss_mask': loss_mask, 'loss_dice': loss_dice}


# ----------------------------------------------------------------------------
# Surrogate inner criterion (the real VideoSetCriterion[Prompt] is external)
# ----------------------------------------------------------------------------
class _SurrogateVideoSetCriterion:
    """Stand-in for univs VideoSetCriterion / VideoSetCriterionPrompt.

    # TODO(synk): the real classes run a Hungarian matcher, point-sampled mask
    # losses, aux-layer loss accumulation and a contrastive re-id loss; those
    # modules are not part of the provided source, so a fixed identity
    # assignment (query i <-> GT i) is used, only the top-level predictions
    # are supervised and re-id / embedding outputs are not consumed.
    """

    def __init__(self, num_classes, eos_coef):
        self.num_classes = num_classes
        self.eos_coef = eos_coef

    def prepare(self, outputs, targets):
        pred_logits = outputs['pred_logits']           # [B, Qx, C+1]
        pred_masks = outputs['pred_masks']              # [B, Qx, T, H, W]
        B, Qx, C1 = pred_logits.shape
        if Qx == 0:
            return None
        T, H, W = pred_masks.shape[2:]
        P = T * H * W

        cls_rows, pred_segs, tgt_segs = [], [], []
        for b, tgt in enumerate(targets):
            labels = tgt['labels'].astype(jnp.int32)
            ni = int(labels.shape[0])
            row = jnp.full((Qx,), self.num_classes, jnp.int32).at[:ni].set(labels)
            cls_rows.append(row)
            if ni > 0:
                pred_segs.append(pred_masks[b, :ni].reshape(ni, P))
                # binary targets are exact in bf16 -> half the DMA bytes
                tgt_segs.append(tgt['masks'].reshape(ni, P).astype(jnp.bfloat16))

        return {
            'logits': pred_logits.reshape(B * Qx, C1),
            'classes': jnp.concatenate(cls_rows, axis=0),
            'pred_segs': pred_segs,
            'tgt_segs': tgt_segs,
        }

    def __call__(self, outputs, targets):
        return _compute_losses([self.prepare(outputs, targets)],
                               self.num_classes, self.eos_coef)


# ----------------------------------------------------------------------------
# VideoSetCriterionUni wrapper — mirrors the PyTorch forward()
# ----------------------------------------------------------------------------
class VideoSetCriterionUni:
    def __init__(self, num_classes, eos_coef, num_frames, num_queries,
                 prompt_as_queries=True, disable_learnable_queries_sa1b=False,
                 weight_dict=None, losses=('labels', 'masks'),
                 materialize_reid_splits=False):
        self.num_classes = num_classes
        self.eos_coef = eos_coef
        self.num_frames = num_frames
        self.num_queries = num_queries
        self.prompt_as_queries = prompt_as_queries
        self.disable_learnable_queries_sa1b = disable_learnable_queries_sa1b
        self.weight_dict = weight_dict or {}
        self.losses = list(losses)
        # the surrogate inner criteria do not consume re-id logits, so the
        # full-matrix rearrange/slice copies are skipped unless requested.
        self.materialize_reid_splits = materialize_reid_splits
        self.criterion = _SurrogateVideoSetCriterion(num_classes, eos_coef)
        if self.prompt_as_queries:
            self.criterion_prompt = _SurrogateVideoSetCriterion(num_classes, eos_coef)

    def __call__(self, outputs, targets):
        if not self.prompt_as_queries:
            return self.criterion(outputs, targets)

        if self.disable_learnable_queries_sa1b and targets[0]['dataset_name'] == 'sa_1b':
            num_queries_l = 0 if targets[0]['prompt_as_queries_enable'] else self.num_queries
        else:
            num_queries_l = self.num_queries

        bs = len(targets)
        outputs_learnable, outputs_prompt = {}, {}
        for k, v in outputs.items():
            if v is None:
                outputs_learnable[k] = v
                outputs_prompt[k] = v
            elif isinstance(v, list):
                if k == 'l2v_attn_weights':
                    outputs_prompt[k] = v
                    continue
                if k not in outputs_learnable:
                    outputs_learnable[k] = []
                    outputs_prompt[k] = []
                for v_aux in v:
                    outputs_learnable[k].append(
                        {k_: v_[:, :num_queries_l] for k_, v_ in v_aux.items()
                         if k_ != 'pred_reid_logits'})
                    outputs_prompt[k].append(
                        {k_: v_[:, num_queries_l:] for k_, v_ in v_aux.items()
                         if k_ != 'pred_reid_logits'})
                    if self.materialize_reid_splits:
                        pr_l, pr_p, pr_l2p = self.process_reid_logits(
                            v_aux['pred_reid_logits'], targets[0]['task'], bs, num_queries_l)
                        outputs_learnable[k][-1]['pred_reid_logits'] = pr_l
                        outputs_learnable[k][-1]['pred_reid_logits_l2p'] = pr_l2p
                        outputs_prompt[k][-1]['pred_reid_logits'] = pr_p
                    # TODO(synk): the real criterion consumes the re-id splits;
                    # the surrogate does not, so the 6-D rearrange + strided
                    # slices are skipped by default to save HBM traffic.
                    if 'pred_embds' in outputs_prompt[k][-1]:
                        outputs_learnable[k][-1]['pred_embds_prompt'] = \
                            outputs_prompt[k][-1]['pred_embds']
            elif k == 'pred_reid_logits':
                if self.materialize_reid_splits:
                    v_l, v_p, v_l2p = self.process_reid_logits(
                        v, targets[0]['task'], bs, num_queries_l)
                    outputs_learnable[k] = v_l
                    outputs_learnable[k + '_l2p'] = v_l2p
                    outputs_prompt[k] = v_p
                else:
                    outputs_learnable[k] = v
                    outputs_prompt[k] = v
            else:
                outputs_learnable[k] = v[:, :num_queries_l]
                outputs_prompt[k] = v[:, num_queries_l:]

        if 'pred_embds' in outputs_prompt:
            outputs_learnable['pred_embds_prompt'] = outputs_prompt['pred_embds']

        # Both inner criteria share the same Pallas loss kernels; their loss
        # inputs are fed to the kernels as contiguous row segments of a single
        # padded buffer, so the whole forward issues exactly two pallas_calls
        # (one CE, one mask+dice).
        prep_l = self.criterion.prepare(outputs_learnable, targets)
        prep_p = self.criterion_prompt.prepare(outputs_prompt, targets)
        return _compute_losses([prep_l, prep_p], self.num_classes, self.eos_coef)

    def process_reid_logits(self, pred_reid_logits, task_type, bs, num_queries_l):
        # rearrange '(B Q T) (A P F) -> B Q T A P F', A=B, F=T
        BQT, APF = pred_reid_logits.shape
        T = self.num_frames
        Q = BQT // (bs * T)
        P = APF // (bs * T)
        x = pred_reid_logits.reshape(bs, Q, T, bs, P, T)
        l = x[:, :num_queries_l, :, :, :num_queries_l, :]
        p = x[:, num_queries_l:, :, :, num_queries_l:, :]
        l2p = x[:, :num_queries_l, :, :, num_queries_l:, :]
        flat = lambda a: a.reshape(a.shape[0] * a.shape[1] * a.shape[2], -1)
        return flat(l), flat(p), flat(l2p)


# ----------------------------------------------------------------------------
# Example run
# ----------------------------------------------------------------------------
if __name__ == "__main__":
    key = jax.random.PRNGKey(0)
    B, Ql, Qp, T, C, H, W, D = 2, 8, 8, 2, 4, 16, 16, 32
    Q = Ql + Qp
    ks = jax.random.split(key, 9)

    outputs = {
        'pred_logits': jax.random.normal(ks[0], (B, Q, C + 1), jnp.float32),
        'pred_masks': jax.random.normal(ks[1], (B, Q, T, H, W), jnp.float32),
        'pred_embds': jax.random.normal(ks[2], (B, Q, T, D), jnp.float32),
        'pred_reid_logits': jax.random.normal(ks[3], (B * Q * T, B * Q * T), jnp.float32),
        'aux_outputs': [{
            'pred_logits': jax.random.normal(ks[4], (B, Q, C + 1), jnp.float32),
            'pred_masks': jax.random.normal(ks[5], (B, Q, T, H, W), jnp.float32),
            'pred_embds': jax.random.normal(ks[6], (B, Q, T, D), jnp.float32),
            'pred_reid_logits': jax.random.normal(ks[7], (B * Q * T, B * Q * T), jnp.float32),
        }],
        'l2v_attn_weights': [jax.random.normal(ks[8], (B, Q, 8), jnp.float32)],
        'pred_boxes': None,
    }

    n_inst = 3
    targets = []
    for b in range(B):
        kb = jax.random.fold_in(key, 100 + b)
        labels = jax.random.randint(kb, (n_inst,), 0, C)
        masks = (jax.random.uniform(jax.random.fold_in(kb, 1),
                                    (n_inst, T, H, W)) > 0.5).astype(jnp.float32)
        targets.append({
            'labels': labels,
            'masks': masks,
            'dataset_name': 'ytvis_2019',
            'task': 'detection',
            'prompt_as_queries_enable': True,
        })

    criterion = VideoSetCriterionUni(
        num_classes=C, eos_coef=0.1, num_frames=T, num_queries=Ql,
        prompt_as_queries=True, disable_learnable_queries_sa1b=True,
        weight_dict={'loss_ce': 2.0, 'loss_mask': 5.0, 'loss_dice': 5.0})

    losses = criterion(outputs, targets)
    for leaf in jax.tree_util.tree_leaves(losses):
        jax.block_until_ready(leaf)
    print("KERNEL_OK")
</pallas_src>

<mosaic_0001>
module attributes {stable_mosaic.version = 11 : i64} {
  func.func @_ce_kernel(%arg0: i32, %arg1: memref<32x5xf32, #tpu.memory_space<vmem>>, %arg2: memref<32x1xi32, #tpu.memory_space<vmem>>, %arg3: memref<8x128xf32, #tpu.memory_space<vmem>>) attributes {dimension_semantics = [#tpu.dimension_semantics<parallel>], iteration_bounds = array<i64: 1>, scalar_prefetch = 0 : i64, scratch_operands = 0 : i64, tpu.core_type = #tpu.core_type<tc>, window_params = [{transform_indices = @transform_0, window_bounds = array<i64: 32, 5>}, {transform_indices = @transform_1, window_bounds = array<i64: 32, 1>}, {transform_indices = @transform_2, window_bounds = array<i64: 8, 128>}]} {
    %c0 = arith.constant 0 : index
    %c0_0 = arith.constant 0 : index
    %0 = vector.load %arg1[%c0, %c0_0] : memref<32x5xf32, #tpu.memory_space<vmem>>, vector<32x5xf32>
    %c0_1 = arith.constant 0 : index
    %c0_2 = arith.constant 0 : index
    %1 = vector.load %arg2[%c0_1, %c0_2] : memref<32x1xi32, #tpu.memory_space<vmem>>, vector<32x1xi32>
    %2 = tpu.iota {dimensions = array<i32: 1>} : vector<32x5xi32>
    %cst = arith.constant dense<0xFF800000> : vector<32xf32>
    %3 = vector.multi_reduction <maximumf>, %0, %cst [1] : vector<32x5xf32> to vector<32xf32>
    %4 = vector.shape_cast %3 : vector<32xf32> to vector<32x1xf32>
    %5 = vector.broadcast %4 : vector<32x1xf32> to vector<32x5xf32>
    %6 = arith.subf %0, %5 : vector<32x5xf32>
    %7 = math.exp %6 : vector<32x5xf32>
    %cst_3 = arith.constant dense<0.000000e+00> : vector<32xf32>
    %8 = vector.multi_reduction <add>, %7, %cst_3 [1] : vector<32x5xf32> to vector<32xf32>
    %9 = vector.shape_cast %8 : vector<32xf32> to vector<32x1xf32>
    %10 = math.log %9 : vector<32x1xf32>
    %11 = arith.addf %4, %10 : vector<32x1xf32>
    %12 = vector.broadcast %1 : vector<32x1xi32> to vector<32x5xi32>
    %13 = arith.cmpi eq, %2, %12 : vector<32x5xi32>
    %cst_4 = arith.constant 0.000000e+00 : f32
    %14 = vector.broadcast %cst_4 : f32 to vector<32x5xf32>
    %15 = arith.select %13, %0, %14 : vector<32x5xi1>, vector<32x5xf32>
    %cst_5 = arith.constant dense<0.000000e+00> : vector<32xf32>
    %16 = vector.multi_reduction <add>, %15, %cst_5 [1] : vector<32x5xf32> to vector<32xf32>
    %17 = vector.shape_cast %16 : vector<32xf32> to vector<32x1xf32>
    %18 = arith.subf %11, %17 : vector<32x1xf32>
    %c4_i32 = arith.constant 4 : i32
    %19 = vector.broadcast %c4_i32 : i32 to vector<32x1xi32>
    %20 = arith.cmpi eq, %1, %19 : vector<32x1xi32>
    %cst_6 = arith.constant 1.000000e-01 : f32
    %cst_7 = arith.constant 1.000000e+00 : f32
    %21 = vector.broadcast %cst_6 : f32 to vector<32x1xf32>
    %22 = vector.broadcast %cst_7 : f32 to vector<32x1xf32>
    %23 = arith.select %20, %21, %22 : vector<32x1xi1>, vector<32x1xf32>
    %c32_i32 = arith.constant 32 : i32
    %24 = arith.muli %arg0, %c32_i32 : i32
    %25 = tpu.iota {dimensions = array<i32: 0>} : vector<32x1xi32>
    %26 = vector.broadcast %24 : i32 to vector<32x1xi32>
    %27 = arith.addi %26, %25 : vector<32x1xi32>
    %c32_i32_8 = arith.constant 32 : i32
    %28 = vector.broadcast %c32_i32_8 : i32 to vector<32x1xi32>
    %29 = arith.cmpi slt, %27, %28 : vector<32x1xi32>
    %cst_9 = arith.constant 1.000000e+00 : f32
    %cst_10 = arith.constant 0.000000e+00 : f32
    %30 = vector.broadcast %cst_9 : f32 to vector<32x1xf32>
    %31 = vector.broadcast %cst_10 : f32 to vector<32x1xf32>
    %32 = arith.select %29, %30, %31 : vector<32x1xi1>, vector<32x1xf32>
    %c16_i32 = arith.constant 16 : i32
    %33 = vector.broadcast %c16_i32 : i32 to vector<32x1xi32>
    %34 = arith.cmpi slt, %27, %33 : vector<32x1xi32>
    %cst_11 = arith.constant 1.000000e+00 : f32
    %cst_12 = arith.constant 0.000000e+00 : f32
    %35 = vector.broadcast %cst_11 : f32 to vector<32x1xf32>
    %36 = vector.broadcast %cst_12 : f32 to vector<32x1xf32>
    %37 = arith.select %34, %35, %36 : vector<32x1xi1>, vector<32x1xf32>
    %38 = arith.mulf %23, %32 : vector<32x1xf32>
    %39 = arith.mulf %38, %37 : vector<32x1xf32>
    %40 = arith.mulf %23, %32 : vector<32x1xf32>
    %41 = arith.subf %40, %39 : vector<32x1xf32>
    %42 = arith.mulf %18, %39 : vector<32x1xf32>
    %cst_13 = arith.constant dense<0.000000e+00> : vector<1xf32>
    %43 = vector.multi_reduction <add>, %42, %cst_13 [0] : vector<32x1xf32> to vector<1xf32>
    %44 = vector.shape_cast %43 : vector<1xf32> to vector<1x1xf32>
    %cst_14 = arith.constant dense<0.000000e+00> : vector<1xf32>
    %45 = vector.multi_reduction <add>, %39, %cst_14 [0] : vector<32x1xf32> to vector<1xf32>
    %46 = vector.shape_cast %45 : vector<1xf32> to vector<1x1xf32>
    %47 = arith.mulf %18, %41 : vector<32x1xf32>
    %cst_15 = arith.constant dense<0.000000e+00> : vector<1xf32>
    %48 = vector.multi_reduction <add>, %47, %cst_15 [0] : vector<32x1xf32> to vector<1xf32>
    %49 = vector.shape_cast %48 : vector<1xf32> to vector<1x1xf32>
    %cst_16 = arith.constant dense<0.000000e+00> : vector<1xf32>
    %50 = vector.multi_reduction <add>, %41, %cst_16 [0] : vector<32x1xf32> to vector<1xf32>
    %51 = vector.shape_cast %50 : vector<1xf32> to vector<1x1xf32>
    %52 = tpu.iota {dimensions = array<i32: 1>} : vector<8x128xi32>
    %53 = tpu.iota {dimensions = array<i32: 0>} : vector<8x128xi32>
    %c0_i32 = arith.constant 0 : i32
    %54 = vector.broadcast %c0_i32 : i32 to vector<8x128xi32>
    %55 = arith.cmpi eq, %53, %54 : vector<8x128xi32>
    %c0_i32_17 = arith.constant 0 : i32
    %56 = vector.broadcast %c0_i32_17 : i32 to vector<8x128xi32>
    %57 = arith.cmpi eq, %52, %56 : vector<8x128xi32>
    %58 = arith.andi %55, %57 : vector<8x128xi1>
    %cst_18 = arith.constant 0.000000e+00 : f32
    %59 = vector.shape_cast %44 : vector<1x1xf32> to vector<1x1xf32>
    %60 = vector.broadcast %59 : vector<1x1xf32> to vector<8x128xf32>
    %61 = vector.broadcast %cst_18 : f32 to vector<8x128xf32>
    %62 = arith.select %58, %60, %61 : vector<8x128xi1>, vector<8x128xf32>
    %c0_i32_19 = arith.constant 0 : i32
    %63 = vector.broadcast %c0_i32_19 : i32 to vector<8x128xi32>
    %64 = arith.cmpi eq, %53, %63 : vector<8x128xi32>
    %c1_i32 = arith.constant 1 : i32
    %65 = vector.broadcast %c1_i32 : i32 to vector<8x128xi32>
    %66 = arith.cmpi eq, %52, %65 : vector<8x128xi32>
    %67 = arith.andi %64, %66 : vector<8x128xi1>
    %cst_20 = arith.constant 0.000000e+00 : f32
    %68 = vector.shape_cast %46 : vector<1x1xf32> to vector<1x1xf32>
    %69 = vector.broadcast %68 : vector<1x1xf32> to vector<8x128xf32>
    %70 = vector.broadcast %cst_20 : f32 to vector<8x128xf32>
    %71 = arith.select %67, %69, %70 : vector<8x128xi1>, vector<8x128xf32>
    %72 = arith.addf %62, %71 : vector<8x128xf32>
    %c0_i32_21 = arith.constant 0 : i32
    %73 = vector.broadcast %c0_i32_21 : i32 to vector<8x128xi32>
    %74 = arith.cmpi eq, %53, %73 : vector<8x128xi32>
    %c2_i32 = arith.constant 2 : i32
    %75 = vector.broadcast %c2_i32 : i32 to vector<8x128xi32>
    %76 = arith.cmpi eq, %52, %75 : vector<8x128xi32>
    %77 = arith.andi %74, %76 : vector<8x128xi1>
    %cst_22 = arith.constant 0.000000e+00 : f32
    %78 = vector.shape_cast %49 : vector<1x1xf32> to vector<1x1xf32>
    %79 = vector.broadcast %78 : vector<1x1xf32> to vector<8x128xf32>
    %80 = vector.broadcast %cst_22 : f32 to vector<8x128xf32>
    %81 = arith.select %77, %79, %80 : vector<8x128xi1>, vector<8x128xf32>
    %82 = arith.addf %72, %81 : vector<8x128xf32>
    %c0_i32_23 = arith.constant 0 : i32
    %83 = vector.broadcast %c0_i32_23 : i32 to vector<8x128xi32>
    %84 = arith.cmpi eq, %53, %83 : vector<8x128xi32>
    %c3_i32 = arith.constant 3 : i32
    %85 = vector.broadcast %c3_i32 : i32 to vector<8x128xi32>
    %86 = arith.cmpi eq, %52, %85 : vector<8x128xi32>
    %87 = arith.andi %84, %86 : vector<8x128xi1>
    %cst_24 = arith.constant 0.000000e+00 : f32
    %88 = vector.shape_cast %51 : vector<1x1xf32> to vector<1x1xf32>
    %89 = vector.broadcast %88 : vector<1x1xf32> to vector<8x128xf32>
    %90 = vector.broadcast %cst_24 : f32 to vector<8x128xf32>
    %91 = arith.select %87, %89, %90 : vector<8x128xi1>, vector<8x128xf32>
    %92 = arith.addf %82, %91 : vector<8x128xf32>
    %c0_25 = arith.constant 0 : index
    %c0_26 = arith.constant 0 : index
    %93 = vector.load %arg3[%c0_25, %c0_26] : memref<8x128xf32, #tpu.memory_space<vmem>>, vector<8x128xf32>
    tpu.vector_store %arg3[%c0_25, %c0_26], %92 {strides = array<i32>} : memref<8x128xf32, #tpu.memory_space<vmem>>, vector<8x128xf32>,
    return
  }
  func.func @transform_0(%arg0: i32) -> (i32, i32) {
    %c0_i32 = arith.constant 0 : i32
    %c0_i32_0 = arith.constant 0 : i32
    return %arg0, %c0_i32 : i32, i32
  }
  func.func @transform_1(%arg0: i32) -> (i32, i32) {
    %c0_i32 = arith.constant 0 : i32
    %c0_i32_0 = arith.constant 0 : i32
    return %arg0, %c0_i32 : i32, i32
  }
  func.func @transform_2(%arg0: i32) -> (i32, i32) {
    %c0_i32 = arith.constant 0 : i32
    %c0_i32_0 = arith.constant 0 : i32
    return %arg0, %c0_i32 : i32, i32
  }
}

</mosaic_0001>

<bundles_post_ra>
// kernel: tpu_custom_call.1
= control target key start
LH: loop header
LB: loop body
LE: loop exit
PB: predicated region body
PF: predicated region fallthrough
CT: control target
= control target key end

     0   :  { %vm22_vm0 = vcmask 39936   ;;  %v311_v6 = vmov 0   ;;  %s467_s0 = inlined_call_operand.vmem [shape: f32[32,5], index: 0, kind: input, shape index: {}]   ;;  %s468_s1 = inlined_call_operand.vmem [shape: s32[32,1], index: 1, kind: input, shape index: {}]   ;;  %s469_s2 = inlined_call_operand.hbm [shape: f32[8,128], index: 2, kind: output, shape index: {}]  }
   0x1   :  { %v332_v0 = vld [vmem:[%s467_s0] sm:$0xff]  ;;  %v337_v1 = vld [vmem:[%s467_s0 + $0x10] sm:$0xff]  ;;  %v342_v2 = vld [vmem:[%s467_s0 + $0x8] sm:$0xff]  ;;  %270 = vset.pattern.permute.xlu1 %v311_v6  ;;  %269 = vset.pattern.permute.xlu0 %v311_v6 }
   0x2   :  { %v23_v3 = vsel %vm22_vm0, %v332_v0, -inf  ;;  %v29_v4 = vsel %vm22_vm0, %v337_v1, -inf  ;;  %v351_v5 = vld [vmem:[%s467_s0 + $0x18] sm:$0xff]  ;;  %v26_v7 = vsel %vm22_vm0, %v342_v2, -inf }
   0x3   :  { %24 = vmax.xlane.f32.xlu0 %v23_v3  ;;  %30 = vmax.xlane.f32.xlu1 %v29_v4  ;;  %v32_v8 = vsel %vm22_vm0, %v351_v5, -inf }
   0x4   :  { %7 = vsyncpa [#allocation3], 0  ;;  %v17_v9 = vld [vmem:[%s468_s1 + $0x8] sm:$0xff]  ;;  %v18_v10 = vld [vmem:[%s468_s1 + $0x10] sm:$0xff]  ;;  %v20_v26 = vlaneseq  ;;  %vm158_vm4 = vcmask 7168   ;;  %v312_v27 = vmov 1.0  }
   0x5   :  { %v16_v11 = vld [vmem:[%s468_s1] sm:$0xff]  ;;  %v19_v12 = vld [vmem:[%s468_s1 + $0x18] sm:$0xff]  ;;  %vm108_vm1 = vcmp.eq.s32.totalorder %v17_v9, 4  ;;  %vm109_vm2 = vcmp.eq.s32.totalorder %v18_v10, 4  ;;  %s313_s1 = smov [#allocation2]  }
   0x6   :  { %vm107_vm3 = vcmp.eq.s32.totalorder %v16_v11, 4  ;;  %v385_v28 = vsel %vm108_vm1, 0.1, %v312_v27  ;;  %v387_v29 = vsel %vm109_vm2, 0.1, %v312_v27  ;;  %vm110_vm5 = vcmp.eq.s32.totalorder %v19_v12, 4 }
   0x7   :  { %27 = vmax.xlane.f32.xlu0 %v26_v7  ;;  %33 = vmax.xlane.f32.xlu1 %v32_v8  ;;  %v389_v30 = vsel %vm107_vm3, 0.1, %v312_v27  ;;  %v392_v31 = vand.u32 127, %v20_v26  ;;  %v173_v33 = vsel %vm158_vm4, %v385_v28, 0.0  ;;  %v397_v34 = vmul.f32 0.0, %v387_v29  ;;  %s258_s24 = sshll.u32 %s313_s1, 4  ;;  %s259_s24 = int_to_ptr.vmem [resolvable:$true] %s258_s24 }
   0x8   :  { %v172_v35 = vsel %vm158_vm4, %v389_v30, 0.0  ;;  %v114_v38 = vsel %vm110_vm5, 0.1, %v312_v27  ;;  %v150_v7 = vsub.f32 %v389_v30, %v389_v30  ;;  %s287_s25 = scalar_lea.vmem %s259_s24, 128  ;;  %p292_p1 = scmp.lt.s32.totalorder %s259_s24, %s259_s24 }
   0x9   :  { %v174_v41 = vadd.f32 %v173_v33, %v172_v35  ;;  %v175_v44 = vsel %vm158_vm4, %v397_v34, 0.0  ;;  %v406_v45 = vmul.f32 0.0, %v114_v38  ;;  %vm224_vm11 = vcmp.eq.s32.totalorder %v392_v31, 1  ;;  %p288_p0 = scmp.ne.s32.totalorder %s259_s24, %s287_s25  ;;  %p293_p2 = scmp.lt.s32.totalorder %s287_s25, %s287_s25 }
   0xa   :  { %v202_v8 = vsel %vm158_vm4, %v150_v7, 0.0  ;;  %vm216_vm12 = vcmp.eq.s32.totalorder %v392_v31, 0  ;;  %vm233_vm14 = vcmp.eq.s32.totalorder %v392_v31, 2 }
   0xb   :  { %v176_v49 = vadd.f32 %v175_v44, %v174_v41  ;;  %v177_v52 = vsel %vm158_vm4, %v406_v45, 0.0  ;;  %p294_p3 = por %p293_p2, %p292_p1 }
   0xd   :  { %v178_v55 = vadd.f32 %v177_v52, %v176_v49  ;;  %p295_p4 = pnand %p294_p3, %p288_p0 }
   0xf   :  { %v179_v59 = vrot.slane %v178_v55, 4 }
  0x11   :  { %v180_v61 = vadd.f32 %v179_v59, %v178_v55 }
  0x13   :  { %v181_v63 = vrot.slane %v180_v61, 2 }
  0x18   :  { %75 = vperm.xlu1 %270, %v17_v9  }
  0x1c   :  { %78 = vperm.xlu1 %270, %v18_v10  }
  0x1d   :  { %72 = vperm.xlu0 %269, %v16_v11   ;;  %v152_v11 = vsub.f32 %v387_v29, %v397_v34 }
  0x20   :  { %81 = vperm.xlu1 %270, %v19_v12  }
  0x90   :  { %v369_v13 = vpop.xlane.xlu0 %24  ;;  %v371_v14 = vpop.xlane.xlu1 %30 }
  0x91   :  { %v35_v15 = vsub.f32 %v332_v0, %v369_v13  ;;  %v37_v16 = vsub.f32 %v337_v1, %v371_v14 }
  0x93   :  { %v39_v17 = vmul.f32 1.442695, %v35_v15  ;;  %v43_v18 = vmul.f32 1.442695, %v37_v16  ;;  %v205_v16 = vsel %vm158_vm4, %v152_v11, 0.0 }
  0x94   :  { %v377_v19 = vpop.xlane.xlu0 %27  ;;  %v379_v20 = vpop.xlane.xlu1 %33 }
  0x95   :  { %271 = vpow2.f32 %v39_v17  ;;  %v36_v21 = vsub.f32 %v342_v2, %v377_v19  ;;  %v38_v22 = vsub.f32 %v351_v5, %v379_v20 }
  0x96   :  { %273 = vpow2.f32 %v43_v18 }
  0x97   :  { %v41_v23 = vmul.f32 1.442695, %v36_v21  ;;  %v45_v24 = vmul.f32 1.442695, %v38_v22  ;;  %v153_v21 = vsub.f32 %v114_v38, %v406_v45 }
  0x98   :  { %v76_v25 = vpop.permute.xlu1 %75 }
  0x99   :  { %275 = vpow2.f32 %v41_v23  ;;  %vm84_vm8 = vcmp.eq.s32.totalorder %v392_v31, %v76_v25  ;;  %v207_v25 = vsel %vm158_vm4, %v153_v21, 0.0 }
  0x9a   :  { %277 = vpow2.f32 %v45_v24  ;;  %v88_v57 = vsel %vm84_vm8, %v342_v2, 0.0 }
  0x9b   :  { %v94_v58 = vsel %vm22_vm0, %v88_v57, 0.0 }
  0x9c   :  { %v79_v36 = vpop.permute.xlu1 %78  ;;  %v73_v40 = vpop.permute.xlu0 %72 }
  0x9d   :  { %vm85_vm6 = vcmp.eq.s32.totalorder %v392_v31, %v79_v36  ;;  %vm83_vm7 = vcmp.eq.s32.totalorder %v392_v31, %v73_v40 }
  0x9e   :  { %v89_v46 = vsel %vm85_vm6, %v337_v1, 0.0  ;;  %v87_v53 = vsel %vm83_vm7, %v332_v0, 0.0  ;;  %v182_v0 = vadd.f32 %v181_v63, %v180_v61 }
  0x9f   :  { %v272_v32 = vpop.eup %271  ;;  %v97_v51 = vsel %vm22_vm0, %v89_v46, 0.0  ;;  %v91_v54 = vsel %vm22_vm0, %v87_v53, 0.0 }
  0xa0   :  { %v274_v37 = vpop.eup %273  ;;  %v47_v39 = vsel %vm22_vm0, %v272_v32, 0.0  ;;  %v82_v56 = vpop.permute.xlu1 %81  ;;  %v183_v1 = vrot.slane %v182_v0, 1 }
  0xa1   :  { %48 = vadd.xlane.f32.xlu1 %v47_v39  ;;  %v53_v42 = vsel %vm22_vm0, %v274_v37, 0.0  ;;  %vm86_vm9 = vcmp.eq.s32.totalorder %v392_v31, %v82_v56 }
  0xa2   :  { %v90_v60 = vsel %vm86_vm9, %v351_v5, 0.0  ;;  %v184_v3 = vadd.f32 %v183_v1, %v182_v0  ;;  %v151_v5 = vsub.f32 %v385_v28, %v385_v28 }
  0xa3   :  { %v276_v43 = vpop.eup %275  ;;  %v100_v62 = vsel %vm22_vm0, %v90_v60, 0.0 }
  0xa4   :  { %v278_v47 = vpop.eup %277  ;;  %v50_v48 = vsel %vm22_vm0, %v276_v43, 0.0  ;;  %v203_v9 = vsel %vm158_vm4, %v151_v5, 0.0 }
  0xa5   :  { %54 = vadd.xlane.f32.xlu1 %v53_v42  ;;  %51 = vadd.xlane.f32.xlu0 %v50_v48  ;;  %v56_v50 = vsel %vm22_vm0, %v278_v47, 0.0  ;;  %v204_v12 = vadd.f32 %v203_v9, %v202_v8  ;;  %vm242_vm0 = vcmp.eq.s32.totalorder %v392_v31, 3 }
  0xa7   :  { %v206_v23 = vadd.f32 %v205_v16, %v204_v12 }
  0xa9   :  { %57 = vadd.xlane.f32.xlu1 %v56_v50  ;;  %98 = vadd.xlane.f32.xlu0 %v97_v51  ;;  %v208_v37 = vadd.f32 %v207_v25, %v206_v23 }
  0xab   :  { %v209_v47 = vrot.slane %v208_v37, 4 }
  0xad   :  { %92 = vadd.xlane.f32.xlu1 %v91_v54 }
  0xb1   :  { %95 = vadd.xlane.f32.xlu1 %v94_v58  ;;  %v210_v58 = vadd.f32 %v209_v47, %v208_v37 }
  0xb5   :  { %101 = vadd.xlane.f32.xlu1 %v100_v62 }
  0xc6   :  { %228 = vperm.xlu1 %270, %v184_v3  }
 0x12e   :  { %v49_v4 = vpop.xlane.xlu1 %48 }
 0x12f   :  { %279 = vlog2.f32 %v49_v4  ;;  %v211_v4 = vrot.slane %v210_v58, 2 }
 0x132   :  { %v55_v2 = vpop.xlane.xlu1 %54  ;;  %v52_v6 = vpop.xlane.xlu0 %51 }
 0x133   :  { %281 = vlog2.f32 %v55_v2 }
 0x134   :  { %283 = vlog2.f32 %v52_v6 }
 0x136   :  { %v58_v10 = vpop.xlane.xlu1 %57  ;;  %v99_v40 = vpop.xlane.xlu0 %98 }
 0x137   :  { %285 = vlog2.f32 %v58_v10 }
 0x139   :  { %v280_v15 = vpop.eup %279 }
 0x13a   :  { %v60_v17 = vmul.f32 0.6931472, %v280_v15  ;;  %v93_v18 = vpop.xlane.xlu1 %92 }
 0x13c   :  { %v67_v22 = vadd.f32 %v60_v17, %v369_v13 }
 0x13d   :  { %v282_v24 = vpop.eup %281 }
 0x13e   :  { %v284_v27 = vpop.eup %283  ;;  %v64_v32 = vmul.f32 0.6931472, %v282_v24  ;;  %v103_v35 = vsub.f32 %v67_v22, %v93_v18  ;;  %v96_v36 = vpop.xlane.xlu1 %95  ;;  %v117_v18 = vshrl.u32 %v20_v26, 7 }
 0x13f   :  { %v62_v33 = vmul.f32 0.6931472, %v284_v27 }
 0x140   :  { %v69_v29 = vadd.f32 %v64_v32, %v371_v14  ;;  %v154_v13 = vmul.f32 %v389_v30, %v103_v35  ;;  %v185_v43 = vmul.f32 %v150_v7, %v103_v35  ;;  %vm215_vm10 = vcmp.eq.s32.totalorder %v117_v18, 0 }
 0x141   :  { %v286_v39 = vpop.eup %285  ;;  %v68_v41 = vadd.f32 %v62_v33, %v377_v19  ;;  %vm225_vm13 = vmand %vm215_vm10, %vm224_vm11 }
 0x142   :  { %v66_v42 = vmul.f32 0.6931472, %v286_v39  ;;  %v105_v38 = vsub.f32 %v69_v29, %v99_v40  ;;  %v102_v51 = vpop.xlane.xlu1 %101  ;;  %v159_v53 = vsel %vm158_vm4, %v154_v13, 0.0  ;;  %v189_v19 = vsel %vm158_vm4, %v185_v43, 0.0  ;;  %vm217_vm15 = vmand %vm215_vm10, %vm216_vm12 }
 0x143   :  { %v104_v44 = vsub.f32 %v68_v41, %v96_v36  ;;  %vm234_vm1 = vmand %vm215_vm10, %vm233_vm14 }
 0x144   :  { %v70_v46 = vadd.f32 %v66_v42, %v379_v20  ;;  %v156_v48 = vmul.f32 %v397_v34, %v105_v38  ;;  %v187_v49 = vmul.f32 %v152_v11, %v105_v38  ;;  %vm243_vm2 = vmand %vm215_vm10, %vm242_vm0 }
 0x145   :  { %v155_v50 = vmul.f32 %v385_v28, %v104_v44  ;;  %v186_v14 = vmul.f32 %v151_v5, %v104_v44  ;;  %v212_v5 = vadd.f32 %v211_v4, %v210_v58 }
 0x146   :  { %v106_v52 = vsub.f32 %v70_v46, %v102_v51  ;;  %v162_v34 = vsel %vm158_vm4, %v156_v48, 0.0  ;;  %v192_v28 = vsel %vm158_vm4, %v187_v49, 0.0 }
 0x147   :  { %v160_v54 = vsel %vm158_vm4, %v155_v50, 0.0  ;;  %v190_v30 = vsel %vm158_vm4, %v186_v14, 0.0  ;;  %v213_v12 = vrot.slane %v212_v5, 1 }
 0x148   :  { %v161_v55 = vadd.f32 %v160_v54, %v159_v53  ;;  %v191_v56 = vadd.f32 %v190_v30, %v189_v19  ;;  %v157_v20 = vmul.f32 %v406_v45, %v106_v52  ;;  %v188_v57 = vmul.f32 %v153_v21, %v106_v52  ;;  %v229_v21 = vpop.permute.xlu1 %228 }
 0x149   :  { %v214_v17 = vadd.f32 %v213_v12, %v212_v5  ;;  %v231_v24 = vsel %vm225_vm13, %v229_v21, 0.0 }
 0x14a   :  { %v163_v59 = vadd.f32 %v162_v34, %v161_v55  ;;  %v164_v60 = vsel %vm158_vm4, %v157_v20, 0.0  ;;  %v193_v61 = vadd.f32 %v192_v28, %v191_v56  ;;  %v194_v62 = vsel %vm158_vm4, %v188_v57, 0.0 }
 0x14c   :  { %v165_v63 = vadd.f32 %v164_v60, %v163_v59  ;;  %v195_v0 = vadd.f32 %v194_v62, %v193_v61 }
 0x14e   :  { %v166_v1 = vrot.slane %v165_v63, 4  ;;  %v196_v3 = vrot.slane %v195_v0, 4 }
 0x150   :  { %v167_v2 = vadd.f32 %v166_v1, %v165_v63  ;;  %v197_v6 = vadd.f32 %v196_v3, %v195_v0 }
 0x152   :  { %v198_v45 = vrot.slane %v197_v6, 2  ;;  %v168_v7 = vrot.slane %v167_v2, 2 }
 0x154   :  { %v199_v8 = vadd.f32 %v198_v45, %v197_v6  ;;  %v169_v9 = vadd.f32 %v168_v7, %v167_v2 }
 0x156   :  { %v200_v10 = vrot.slane %v199_v8, 1  ;;  %v170_v11 = vrot.slane %v169_v9, 1 }
 0x158   :  { %v201_v15 = vadd.f32 %v200_v10, %v199_v8  ;;  %v171_v16 = vadd.f32 %v170_v11, %v169_v9 }
 0x15a   :  { %237 = vperm.xlu1 %270, %v201_v15   ;;  %220 = vperm.xlu0 %269, %v171_v16  }
 0x15e   :  { %246 = vperm.xlu0 %269, %v214_v17  }
 0x1d9   :  { %v238_v22 = vpop.permute.xlu1 %237  ;;  %v221_v23 = vpop.permute.xlu0 %220 }
 0x1da   :  { %v223_v25 = vsel %vm217_vm15, %v221_v23, 0.0  ;;  %v240_v26 = vsel %vm234_vm1, %v238_v22, 0.0 }
 0x1db   :  { %v232_v27 = vadd.f32 %v231_v24, %v223_v25 }
 0x1dd   :  { %v241_v32 = vadd.f32 %v240_v26, %v232_v27  ;;  %v247_v33 = vpop.permute.xlu0 %246 }
 0x1de   :  { %v249_v35 = vsel %vm243_vm2, %v247_v33, 0.0 }
 0x1df   :  { %v250_v36 = vadd.f32 %v249_v35, %v241_v32 }
 0x1e1   :  { %251 = vst [vmem:[#allocation2] sm:$0xff] %v250_v36 }
 0x1e2   :  { %298 = shalt.err (!%p295_p4)
}
 0x1e3   :  { %s299_s28 = scalar_lea.hbm %s469_s2, 128 }
 0x1e4   :  { %p300_p5 = scmp.ne.s32.totalorder %s469_s2, %s299_s28  ;;  %p303_p6 = scmp.lt.u32.totalorder %s299_s28, %s469_s2 }
 0x1e6   :  { %p305_p7 = pnand %p303_p6, %p300_p5 }
 0x1e8   :  { %308 = shalt.err (!%p305_p7)
}
 0x1e9   :  { %261 = dma.vmem_to_hbm [thread:$0]  %s259_s24, 128, %s469_s2, [#allocation3]  }
 0x1ea   :  { %309 = dma.done.wait [#allocation3], 128  }
 0x1eb   :  { %310 = vsyncadd [#allocation3], 4294967168 }
 0x1ec   :  { %265 = vsyncpa [#allocation3], 1 }

</bundles_post_ra>
